<compile_context>
chip_gen: v6e
topology: v6e:2x2x1
jax: 0.10.0
libtpu: 0.0.40
codegen_flags: <defaults>
</compile_context>

<pallas_src>
import functools

import jax
import jax.numpy as jnp
from jax.experimental import pallas as pl
from jax.experimental.pallas import tpu as pltpu


def _attend_kernel(a_ref, b_ref, w1_ref, b1_ref, w2_ref, b2_ref,
                   beta_ref, alpha_ref, *, mxu_dtype):
    Bblk, Sa, D = a_ref.shape
    _, Sb, _ = b_ref.shape
    H = w1_ref.shape[1]

    w1 = w1_ref[...].astype(mxu_dtype)            # (D, H)
    w2 = w2_ref[...].astype(mxu_dtype)            # (H, H)
    b1 = b1_ref[...].astype(jnp.float32)          # (1, H)
    b2 = b2_ref[...].astype(jnp.float32)          # (1, H)

    A = a_ref[...]                                # (Bblk, Sa, D)
    B = b_ref[...]                                # (Bblk, Sb, D)

    # ---- MLP f() on the fused (A;B) row slab: weights hit the MXU once. ----
    rows_a = Bblk * Sa
    x_all = jnp.concatenate(
        [A.reshape(rows_a, D), B.reshape(Bblk * Sb, D)], axis=0
    ).astype(mxu_dtype)                           # (Bblk*(Sa+Sb), D)
    h = jnp.dot(x_all, w1, preferred_element_type=jnp.float32) + b1
    h = jnp.maximum(h, 0.0).astype(mxu_dtype)
    h = jnp.dot(h, w2, preferred_element_type=jnp.float32) + b2
    f_all = jnp.maximum(h, 0.0).astype(mxu_dtype)

    f_A = f_all[:rows_a, :].reshape(Bblk, Sa, H)
    f_B = f_all[rows_a:, :].reshape(Bblk, Sb, H)

    def softmax_last(x):                          # exact softmax over lanes
        m = jnp.max(x, axis=-1, keepdims=True)
        p = jnp.exp(x - m)
        return p / jnp.sum(p, axis=-1, keepdims=True)

    # ---- beta path first: only one f32 score matrix live at a time. -------
    e = jnp.einsum("bqh,bkh->bqk", f_A, f_B,
                   preferred_element_type=jnp.float32)          # (Bblk,Sa,Sb)
    s_beta = softmax_last(e).astype(mxu_dtype)
    beta = jnp.einsum("bqk,bkd->bqd", s_beta, B.astype(mxu_dtype),
                      preferred_element_type=jnp.float32)       # (Bblk,Sa,D)
    beta_ref[...] = beta.astype(beta_ref.dtype)

    # ---- alpha path: e^T by a second cheap MXU matmul, no XLU transpose. --
    eT = jnp.einsum("bkh,bqh->bkq", f_B, f_A,
                    preferred_element_type=jnp.float32)         # (Bblk,Sb,Sa)
    s_alpha = softmax_last(eT).astype(mxu_dtype)
    alpha = jnp.einsum("bkq,bqd->bkd", s_alpha, A.astype(mxu_dtype),
                       preferred_element_type=jnp.float32)      # (Bblk,Sb,D)
    alpha_ref[...] = alpha.astype(alpha_ref.dtype)


def _vmem_limit_bytes():
    """Chip-aware scoped-VMEM limit (~75% of capacity)."""
    cap = 64 * 1024 * 1024                      # conservative default (v7x/TC)
    try:
        info = pltpu.get_tpu_info()
        cap = getattr(info, "vmem_capacity_bytes", cap) or cap
    except Exception:
        pass
    return (3 * cap) // 4                       # 96 MiB on v5e/v6e, 48 MiB on v7x


def _pick_block_batch(bs, Sa, Sb, D, H, in_itemsize, vmem_budget_bytes):
    """Largest batch-block whose per-step VMEM footprint fits the budget,
    while keeping >=2 grid steps so megacore chips can shard the batch axis."""
    def step_bytes(d):
        io = 2 * 2 * d * (Sa + Sb) * D * in_itemsize      # in+out tiles, double-buffered
        w = 2 * (D * H + H * H + 2 * H) * 4               # weights/biases, x2 buffers
        tmp = d * ((Sa + Sb) * (D * 6 + H * 10)           # bf16 slabs + f32 hidden acts
                   + Sa * Sb * 14                         # f32 scores + softmax temps + bf16 probs
                   + (Sa + Sb) * D * 6)                   # f32 beta/alpha + bf16 A/B casts
        return io + w + (3 * tmp) // 2                    # 1.5x fudge for compiler temps
    limit = max(1, bs // 2)                               # >=2 grid steps when bs >= 2
    feasible = [d for d in range(1, limit + 1) if step_bytes(d) <= vmem_budget_bytes]
    if not feasible:
        return 1
    best_any = max(feasible)
    best_div = max((d for d in feasible if bs % d == 0), default=1)
    # Prefer an exact divisor (no masked tail block) unless it is much smaller.
    return best_div if 2 * best_div >= best_any else best_any


def attend(A, B, w1, b1, w2, b2, *, block_batch=None, mxu_dtype=None):
    """A: (bs, Sa, D), B: (bs, Sb, D); w1: (D, H), b1: (H,), w2: (H, H), b2: (H,).

    Computes x @ w1 + b1 etc. (torch.nn.Linear with weight.T)."""
    bs, Sa, D = A.shape
    _, Sb, _ = B.shape
    H = w1.shape[1]
    dtype = A.dtype
    itemsize = jnp.dtype(dtype).itemsize

    if mxu_dtype is None:
        # f32 inputs -> bf16 MXU operands (f32 accumulation kept in-kernel).
        mxu_dtype = jnp.bfloat16 if dtype == jnp.float32 else dtype

    vmem_limit = _vmem_limit_bytes()
    Bblk = block_batch if block_batch is not None else _pick_block_batch(
        bs, Sa, Sb, D, H, itemsize, vmem_limit // 2)
    Bblk = max(1, min(Bblk, bs))
    num_steps = pl.cdiv(bs, Bblk)
    grid = (num_steps,)

    b1_2d = b1.reshape(1, H)
    b2_2d = b2.reshape(1, H)

    out_shapes = (
        jax.ShapeDtypeStruct((bs, Sa, D), dtype),   # beta
        jax.ShapeDtypeStruct((bs, Sb, D), dtype),   # alpha
    )

    grid_spec = pltpu.PrefetchScalarGridSpec(
        num_scalar_prefetch=0,
        grid=grid,
        in_specs=[
            pl.BlockSpec((Bblk, Sa, D), lambda i: (i, 0, 0)),   # A
            pl.BlockSpec((Bblk, Sb, D), lambda i: (i, 0, 0)),   # B
            pl.BlockSpec((D, H), lambda i: (0, 0)),             # w1 (grid-invariant)
            pl.BlockSpec((1, H), lambda i: (0, 0)),             # b1
            pl.BlockSpec((H, H), lambda i: (0, 0)),             # w2
            pl.BlockSpec((1, H), lambda i: (0, 0)),             # b2
        ],
        out_specs=[
            pl.BlockSpec((Bblk, Sa, D), lambda i: (i, 0, 0)),   # beta
            pl.BlockSpec((Bblk, Sb, D), lambda i: (i, 0, 0)),   # alpha
        ],
    )

    flops = bs * (2 * (Sa + Sb) * D * H          # first linear
                  + 2 * (Sa + Sb) * H * H        # second linear
                  + 2 * Sa * Sb * H              # e
                  + 2 * Sa * Sb * H              # e^T
                  + 2 * Sa * Sb * D              # beta
                  + 2 * Sa * Sb * D)             # alpha
    transcendentals = 2 * bs * Sa * Sb
    bytes_accessed = int(
        2 * (A.size + B.size) * itemsize                         # in + out streams
        + (w1.size + w2.size + b1.size + b2.size) * jnp.dtype(w1.dtype).itemsize)
    cost = pl.CostEstimate(flops=int(flops),
                           transcendentals=int(transcendentals),
                           bytes_accessed=bytes_accessed)

    beta, alpha = pl.pallas_call(
        functools.partial(_attend_kernel, mxu_dtype=mxu_dtype),
        out_shape=out_shapes,
        grid_spec=grid_spec,
        compiler_params=pltpu.CompilerParams(
            dimension_semantics=("parallel",),
            vmem_limit_bytes=int(vmem_limit)),
        cost_estimate=cost,
    )(A, B, w1, b1_2d, w2, b2_2d)

    return beta, alpha


def attend_reference(A, B, w1, b1, w2, b2, mxu_dtype=None):
    """Pure-JAX reference. With mxu_dtype set, casts matmul operands at the
    same points as the kernel (isolates algorithmic errors from rounding)."""
    cast = (lambda x: x.astype(mxu_dtype)) if mxu_dtype is not None else (lambda x: x)

    def mlp_f(x):
        h = jnp.maximum(
            jnp.dot(cast(x), cast(w1), preferred_element_type=jnp.float32) + b1, 0.0)
        return jnp.maximum(
            jnp.dot(cast(h), cast(w2), preferred_element_type=jnp.float32) + b2, 0.0)

    f_A = mlp_f(A)
    f_B = mlp_f(B)
    e = jnp.einsum("bij,bkj->bik", cast(f_A), cast(f_B),
                   preferred_element_type=jnp.float32)
    s_beta = jax.nn.softmax(e, axis=-1)
    s_alpha = jax.nn.softmax(e, axis=-2)
    beta = jnp.einsum("bik,bkd->bid", cast(s_beta), cast(B),
                      preferred_element_type=jnp.float32)
    alpha = jnp.einsum("bki,bkd->bid", cast(s_alpha), cast(A),
                       preferred_element_type=jnp.float32)
    return beta.astype(A.dtype), alpha.astype(A.dtype)


if __name__ == "__main__":
    # Small shapes consistent with the module's forward (b, seq, num_inputs).
    batch, seq_a, seq_b = 2, 8, 8
    num_inputs, num_hiddens = 32, 32

    key = jax.random.PRNGKey(0)
    kA, kB, kw1, kb1, kw2, kb2 = jax.random.split(key, 6)

    A = jax.random.normal(kA, (batch, seq_a, num_inputs), dtype=jnp.float32)
    B = jax.random.normal(kB, (batch, seq_b, num_inputs), dtype=jnp.float32)

    # Deterministic parameter init (Linear-like scaling).
    w1 = jax.random.normal(kw1, (num_inputs, num_hiddens), jnp.float32) / jnp.sqrt(num_inputs)
    b1 = jax.random.normal(kb1, (num_hiddens,), jnp.float32) * 0.01
    w2 = jax.random.normal(kw2, (num_hiddens, num_hiddens), jnp.float32) / jnp.sqrt(num_hiddens)
    b2 = jax.random.normal(kb2, (num_hiddens,), jnp.float32) * 0.01

    beta, alpha = attend(A, B, w1, b1, w2, b2)
    jax.block_until_ready((beta, alpha))

    # Tight check against a reference that rounds the MXU operands to bf16 at
    # exactly the same points as the kernel.
    beta_m, alpha_m = attend_reference(A, B, w1, b1, w2, b2, mxu_dtype=jnp.bfloat16)
    assert jnp.allclose(beta, beta_m, atol=2e-3, rtol=2e-3), "beta mismatch (bf16-matched ref)"
    assert jnp.allclose(alpha, alpha_m, atol=2e-3, rtol=2e-3), "alpha mismatch (bf16-matched ref)"

    # Loose check against the full-float32 reference (bounds bf16 rounding).
    beta_f, alpha_f = attend_reference(A, B, w1, b1, w2, b2)
    assert jnp.allclose(beta, beta_f, atol=1e-1, rtol=1e-1), "beta mismatch (f32 ref)"
    assert jnp.allclose(alpha, alpha_f, atol=1e-1, rtol=1e-1), "alpha mismatch (f32 ref)"

    print("KERNEL_OK")
</pallas_src>

<mosaic_0001>
module attributes {stable_mosaic.version = 11 : i64} {
  func.func @_attend_kernel(%arg0: i32, %arg1: memref<1x8x32xf32, #tpu.memory_space<vmem>>, %arg2: memref<1x8x32xf32, #tpu.memory_space<vmem>>, %arg3: memref<32x32xf32, #tpu.memory_space<vmem>>, %arg4: memref<1x32xf32, #tpu.memory_space<vmem>>, %arg5: memref<32x32xf32, #tpu.memory_space<vmem>>, %arg6: memref<1x32xf32, #tpu.memory_space<vmem>>, %arg7: memref<1x8x32xf32, #tpu.memory_space<vmem>>, %arg8: memref<1x8x32xf32, #tpu.memory_space<vmem>>) attributes {dimension_semantics = [#tpu.dimension_semantics<parallel>], iteration_bounds = array<i64: 2>, scalar_prefetch = 0 : i64, scratch_operands = 0 : i64, tpu.core_type = #tpu.core_type<tc>, window_params = [{transform_indices = @transform_0, window_bounds = array<i64: 1, 8, 32>}, {transform_indices = @transform_1, window_bounds = array<i64: 1, 8, 32>}, {pipeline_mode = #tpu.pipeline_mode<synchronous>, transform_indices = @transform_2, window_bounds = array<i64: 32, 32>}, {pipeline_mode = #tpu.pipeline_mode<synchronous>, transform_indices = @transform_3, window_bounds = array<i64: 1, 32>}, {pipeline_mode = #tpu.pipeline_mode<synchronous>, transform_indices = @transform_4, window_bounds = array<i64: 32, 32>}, {pipeline_mode = #tpu.pipeline_mode<synchronous>, transform_indices = @transform_5, window_bounds = array<i64: 1, 32>}, {transform_indices = @transform_6, window_bounds = array<i64: 1, 8, 32>}, {transform_indices = @transform_7, window_bounds = array<i64: 1, 8, 32>}]} {
    %c0 = arith.constant 0 : index
    %c0_0 = arith.constant 0 : index
    %0 = vector.load %arg3[%c0, %c0_0] : memref<32x32xf32, #tpu.memory_space<vmem>>, vector<32x32xf32>
    %1 = arith.truncf %0 : vector<32x32xf32> to vector<32x32xbf16>
    %c0_1 = arith.constant 0 : index
    %c0_2 = arith.constant 0 : index
    %2 = vector.load %arg5[%c0_1, %c0_2] : memref<32x32xf32, #tpu.memory_space<vmem>>, vector<32x32xf32>
    %3 = arith.truncf %2 : vector<32x32xf32> to vector<32x32xbf16>
    %c0_3 = arith.constant 0 : index
    %c0_4 = arith.constant 0 : index
    %4 = vector.load %arg4[%c0_3, %c0_4] : memref<1x32xf32, #tpu.memory_space<vmem>>, vector<1x32xf32>
    %c0_5 = arith.constant 0 : index
    %c0_6 = arith.constant 0 : index
    %5 = vector.load %arg6[%c0_5, %c0_6] : memref<1x32xf32, #tpu.memory_space<vmem>>, vector<1x32xf32>
    %c0_7 = arith.constant 0 : index
    %c0_8 = arith.constant 0 : index
    %c0_9 = arith.constant 0 : index
    %6 = vector.load %arg1[%c0_7, %c0_8, %c0_9] : memref<1x8x32xf32, #tpu.memory_space<vmem>>, vector<1x8x32xf32>
    %c0_10 = arith.constant 0 : index
    %c0_11 = arith.constant 0 : index
    %c0_12 = arith.constant 0 : index
    %7 = vector.load %arg2[%c0_10, %c0_11, %c0_12] : memref<1x8x32xf32, #tpu.memory_space<vmem>>, vector<1x8x32xf32>
    %8 = vector.shape_cast %6 : vector<1x8x32xf32> to vector<8x32xf32>
    %9 = vector.shape_cast %7 : vector<1x8x32xf32> to vector<8x32xf32>
    %10 = tpu.concatenate %8, %9 in 0 : vector<8x32xf32>, vector<8x32xf32> -> vector<16x32xf32>
    %11 = arith.truncf %10 : vector<16x32xf32> to vector<16x32xbf16>
    %cst = arith.constant dense<0.000000e+00> : vector<16x32xf32>
    %12 = tpu.matmul %11, %1, %cst {dimension_numbers = #tpu.dot_dimension_numbers<[1], [0], [0], [1], [0, 0, 1, 1], [], []>} : vector<16x32xbf16>, vector<32x32xbf16>, vector<16x32xf32> -> vector<16x32xf32>
    %13 = vector.broadcast %4 : vector<1x32xf32> to vector<16x32xf32>
    %14 = arith.addf %12, %13 : vector<16x32xf32>
    %cst_13 = arith.constant 0.000000e+00 : f32
    %15 = vector.broadcast %cst_13 : f32 to vector<16x32xf32>
    %16 = arith.maximumf %14, %15 : vector<16x32xf32>
    %17 = arith.truncf %16 : vector<16x32xf32> to vector<16x32xbf16>
    %cst_14 = arith.constant dense<0.000000e+00> : vector<16x32xf32>
    %18 = tpu.matmul %17, %3, %cst_14 {dimension_numbers = #tpu.dot_dimension_numbers<[1], [0], [0], [1], [0, 0, 1, 1], [], []>} : vector<16x32xbf16>, vector<32x32xbf16>, vector<16x32xf32> -> vector<16x32xf32>
    %19 = vector.broadcast %5 : vector<1x32xf32> to vector<16x32xf32>
    %20 = arith.addf %18, %19 : vector<16x32xf32>
    %cst_15 = arith.constant 0.000000e+00 : f32
    %21 = vector.broadcast %cst_15 : f32 to vector<16x32xf32>
    %22 = arith.maximumf %20, %21 : vector<16x32xf32>
    %23 = arith.truncf %22 : vector<16x32xf32> to vector<16x32xbf16>
    %24 = vector.extract_strided_slice %23 {offsets = [0, 0], sizes = [8, 32], strides = [1, 1]} : vector<16x32xbf16> to vector<8x32xbf16>
    %25 = vector.shape_cast %24 : vector<8x32xbf16> to vector<1x8x32xbf16>
    %26 = vector.extract_strided_slice %23 {offsets = [8, 0], sizes = [8, 32], strides = [1, 1]} : vector<16x32xbf16> to vector<8x32xbf16>
    %27 = vector.shape_cast %26 : vector<8x32xbf16> to vector<1x8x32xbf16>
    "tpu.trace_start"() <{level = 10 : i32, message = "bqh,bkh->bqk"}> : () -> ()
    %cst_16 = arith.constant dense<0.000000e+00> : vector<1x8x8xf32>
    %28 = tpu.matmul %25, %27, %cst_16 {dimension_numbers = #tpu.dot_dimension_numbers<[2], [2], [1], [1], [0, 0, 0, 1, 1, 1], [0], [0]>} : vector<1x8x32xbf16>, vector<1x8x32xbf16>, vector<1x8x8xf32> -> vector<1x8x8xf32>
    "tpu.trace_stop"() : () -> ()
    %cst_17 = arith.constant dense<0xFF800000> : vector<1x8xf32>
    %29 = vector.multi_reduction <maximumf>, %28, %cst_17 [2] : vector<1x8x8xf32> to vector<1x8xf32>
    %30 = vector.shape_cast %29 : vector<1x8xf32> to vector<1x8x1xf32>
    %31 = vector.broadcast %30 : vector<1x8x1xf32> to vector<1x8x8xf32>
    %32 = arith.subf %28, %31 : vector<1x8x8xf32>
    %33 = math.exp %32 : vector<1x8x8xf32>
    %cst_18 = arith.constant dense<0.000000e+00> : vector<1x8xf32>
    %34 = vector.multi_reduction <add>, %33, %cst_18 [2] : vector<1x8x8xf32> to vector<1x8xf32>
    %35 = vector.shape_cast %34 : vector<1x8xf32> to vector<1x8x1xf32>
    %36 = vector.broadcast %35 : vector<1x8x1xf32> to vector<1x8x8xf32>
    %37 = arith.divf %33, %36 : vector<1x8x8xf32>
    %38 = arith.truncf %37 : vector<1x8x8xf32> to vector<1x8x8xbf16>
    %39 = arith.truncf %7 : vector<1x8x32xf32> to vector<1x8x32xbf16>
    "tpu.trace_start"() <{level = 10 : i32, message = "bqk,bkd->bqd"}> : () -> ()
    %cst_19 = arith.constant dense<0.000000e+00> : vector<1x8x32xf32>
    %40 = tpu.matmul %38, %39, %cst_19 {dimension_numbers = #tpu.dot_dimension_numbers<[2], [1], [1], [2], [0, 0, 0, 1, 1, 2], [0], [0]>} : vector<1x8x8xbf16>, vector<1x8x32xbf16>, vector<1x8x32xf32> -> vector<1x8x32xf32>
    "tpu.trace_stop"() : () -> ()
    %c0_20 = arith.constant 0 : index
    %c0_21 = arith.constant 0 : index
    %c0_22 = arith.constant 0 : index
    %41 = vector.load %arg7[%c0_20, %c0_21, %c0_22] : memref<1x8x32xf32, #tpu.memory_space<vmem>>, vector<1x8x32xf32>
    tpu.vector_store %arg7[%c0_20, %c0_21, %c0_22], %40 {strides = array<i32>} : memref<1x8x32xf32, #tpu.memory_space<vmem>>, vector<1x8x32xf32>,
    "tpu.trace_start"() <{level = 10 : i32, message = "bkh,bqh->bkq"}> : () -> ()
    %cst_23 = arith.constant dense<0.000000e+00> : vector<1x8x8xf32>
    %42 = tpu.matmul %27, %25, %cst_23 {dimension_numbers = #tpu.dot_dimension_numbers<[2], [2], [1], [1], [0, 0, 0, 1, 1, 1], [0], [0]>} : vector<1x8x32xbf16>, vector<1x8x32xbf16>, vector<1x8x8xf32> -> vector<1x8x8xf32>
    "tpu.trace_stop"() : () -> ()
    %cst_24 = arith.constant dense<0xFF800000> : vector<1x8xf32>
    %43 = vector.multi_reduction <maximumf>, %42, %cst_24 [2] : vector<1x8x8xf32> to vector<1x8xf32>
    %44 = vector.shape_cast %43 : vector<1x8xf32> to vector<1x8x1xf32>
    %45 = vector.broadcast %44 : vector<1x8x1xf32> to vector<1x8x8xf32>
    %46 = arith.subf %42, %45 : vector<1x8x8xf32>
    %47 = math.exp %46 : vector<1x8x8xf32>
    %cst_25 = arith.constant dense<0.000000e+00> : vector<1x8xf32>
    %48 = vector.multi_reduction <add>, %47, %cst_25 [2] : vector<1x8x8xf32> to vector<1x8xf32>
    %49 = vector.shape_cast %48 : vector<1x8xf32> to vector<1x8x1xf32>
    %50 = vector.broadcast %49 : vector<1x8x1xf32> to vector<1x8x8xf32>
    %51 = arith.divf %47, %50 : vector<1x8x8xf32>
    %52 = arith.truncf %51 : vector<1x8x8xf32> to vector<1x8x8xbf16>
    %53 = arith.truncf %6 : vector<1x8x32xf32> to vector<1x8x32xbf16>
    "tpu.trace_start"() <{level = 10 : i32, message = "bkq,bqd->bkd"}> : () -> ()
    %cst_26 = arith.constant dense<0.000000e+00> : vector<1x8x32xf32>
    %54 = tpu.matmul %52, %53, %cst_26 {dimension_numbers = #tpu.dot_dimension_numbers<[2], [1], [1], [2], [0, 0, 0, 1, 1, 2], [0], [0]>} : vector<1x8x8xbf16>, vector<1x8x32xbf16>, vector<1x8x32xf32> -> vector<1x8x32xf32>
    "tpu.trace_stop"() : () -> ()
    %c0_27 = arith.constant 0 : index
    %c0_28 = arith.constant 0 : index
    %c0_29 = arith.constant 0 : index
    %55 = vector.load %arg8[%c0_27, %c0_28, %c0_29] : memref<1x8x32xf32, #tpu.memory_space<vmem>>, vector<1x8x32xf32>
    tpu.vector_store %arg8[%c0_27, %c0_28, %c0_29], %54 {strides = array<i32>} : memref<1x8x32xf32, #tpu.memory_space<vmem>>, vector<1x8x32xf32>,
    return
  }
  func.func @transform_0(%arg0: i32) -> (i32, i32, i32) {
    %c0_i32 = arith.constant 0 : i32
    %c0_i32_0 = arith.constant 0 : i32
    %c0_i32_1 = arith.constant 0 : i32
    return %arg0, %c0_i32, %c0_i32_0 : i32, i32, i32
  }
  func.func @transform_1(%arg0: i32) -> (i32, i32, i32) {
    %c0_i32 = arith.constant 0 : i32
    %c0_i32_0 = arith.constant 0 : i32
    %c0_i32_1 = arith.constant 0 : i32
    return %arg0, %c0_i32, %c0_i32_0 : i32, i32, i32
  }
  func.func @transform_2(%arg0: i32) -> (i32, i32) {
    %c0_i32 = arith.constant 0 : i32
    %c0_i32_0 = arith.constant 0 : i32
    %c0_i32_1 = arith.constant 0 : i32
    return %c0_i32, %c0_i32_0 : i32, i32
  }
  func.func @transform_3(%arg0: i32) -> (i32, i32) {
    %c0_i32 = arith.constant 0 : i32
    %c0_i32_0 = arith.constant 0 : i32
    %c0_i32_1 = arith.constant 0 : i32
    return %c0_i32, %c0_i32_0 : i32, i32
  }
  func.func @transform_4(%arg0: i32) -> (i32, i32) {
    %c0_i32 = arith.constant 0 : i32
    %c0_i32_0 = arith.constant 0 : i32
    %c0_i32_1 = arith.constant 0 : i32
    return %c0_i32, %c0_i32_0 : i32, i32
  }
  func.func @transform_5(%arg0: i32) -> (i32, i32) {
    %c0_i32 = arith.constant 0 : i32
    %c0_i32_0 = arith.constant 0 : i32
    %c0_i32_1 = arith.constant 0 : i32
    return %c0_i32, %c0_i32_0 : i32, i32
  }
  func.func @transform_6(%arg0: i32) -> (i32, i32, i32) {
    %c0_i32 = arith.constant 0 : i32
    %c0_i32_0 = arith.constant 0 : i32
    %c0_i32_1 = arith.constant 0 : i32
    return %arg0, %c0_i32, %c0_i32_0 : i32, i32, i32
  }
  func.func @transform_7(%arg0: i32) -> (i32, i32, i32) {
    %c0_i32 = arith.constant 0 : i32
    %c0_i32_0 = arith.constant 0 : i32
    %c0_i32_1 = arith.constant 0 : i32
    return %arg0, %c0_i32, %c0_i32_0 : i32, i32, i32
  }
}

</mosaic_0001>

<bundles_post_ra>
// kernel: tpu_custom_call.1
= control target key start
LH: loop header
LB: loop body
LE: loop exit
PB: predicated region body
PF: predicated region fallthrough
CT: control target
= control target key end

     0   :  { %s1637_s0 = inlined_call_operand.hbm [shape: f32[2,8,32], index: 0, kind: input, shape index: {}]   ;;  %s1638_s1 = inlined_call_operand.hbm [shape: f32[2,8,32], index: 1, kind: input, shape index: {}]   ;;  %s1639_s2 = inlined_call_operand.hbm [shape: f32[32,32], index: 2, kind: input, shape index: {}]   ;;  %s1640_s3 = inlined_call_operand.vmem [shape: f32[1,32], index: 3, kind: input, shape index: {}]   ;;  %s1641_s4 = inlined_call_operand.hbm [shape: f32[32,32], index: 4, kind: input, shape index: {}]   ;;  %s1642_s5 = inlined_call_operand.vmem [shape: f32[1,32], index: 5, kind: input, shape index: {}]   ;;  %s1643_s6 = inlined_call_operand.hbm [shape: f32[2,8,32], index: 6, kind: output, shape index: {0}]   ;;  %s1644_s7 = inlined_call_operand.hbm [shape: f32[2,8,32], index: 7, kind: output, shape index: {1}]  }
   0x1   :  { %1650 = sst [smem:[#allocation21_spill]] %s1639_s2 }
   0x2   :  { %1651 = sst [smem:[#allocation22_spill]] %s1641_s4 }
   0x3   :  { %13 = vsyncpa [#allocation3], 0 }
   0x4   :  { %15 = vsyncpa [#allocation3 + $0x1], 0 }
   0x5   :  { %16 = vsyncpa [#allocation6], 0 }
   0x6   :  { %18 = vsyncpa [#allocation6 + $0x1], 0 }
   0x7   :  { %19 = vsyncpa [#allocation9], 0 }
   0x8   :  { %20 = vsyncpa [#allocation4], 0 }
   0x9   :  { %22 = vsyncpa [#allocation4 + $0x1], 0 }
   0xa   :  { %23 = vsyncpa [#allocation12], 0 }
   0xb   :  { %25 = vsyncpa [#allocation12 + $0x1], 0  ;;  %s1321_s24 = smov 0   ;;  %s1323_s25 = smov 0  }
   0xc   :  { %s1325_s26 = smov 0   ;;  %s1327_s27 = smov 0  }
   0xd LB: > { %1652 = sst [smem:[#allocation19_spill]] %s1265_s26  ;;  %s1342_s28 = sadd.s32 4294967295, %s1269_s27   ;;  %s1269_s27 = sphi %s1327_s27, %s1676_s27   ;;  %s1265_s26 = sphi %s1325_s26, %s1673_s26   ;;  %s1261_s25 = sphi %s1323_s25, %s1675_s25   ;;  %s1257_s24 = sphi %s1321_s24, %s1674_s24  }
   0xe   : > { %s882_s29 = sadd.s32 4294967294, %s1269_s27   ;;  %p51_p0 = scmp.ne.s32.totalorder %s1261_s25, %s1257_s24 }
   0xf   : > { %p1645_p1 = scmp.eq.s32.totalorder %s1342_s28, 0  ;;  %p191_p3 = scmp.eq.s32.totalorder %s882_s29, 1 }
  0x10   : > { %p883_p5 = scmp.ge.s32.totalorder %s1269_s27, 1  ;;  %p224_p7 = scmp.lt.s32.totalorder %s1269_s27, 3 }
  0x11   : > { %p1351_p4 = por %p1645_p1, %p51_p0  ;;  %p1356_p6 = por %p191_p3, %p51_p0 }
  0x12   : > { %p1361_p8 = pnand %p883_p5, %p224_p7  ;;  %s1271_s10 = smov [#allocation7]  }
  0x13   : > { %s1653_s30 = scalar_select %p1351_p4, 1, 0 }
  0x14   : > { %s1654_s8 = scalar_select %p1356_p6, 1, 0 }
  0x15   : > { %s1655_s9 = scalar_select %p1361_p8, 1, 0 }
  0x16   : > { %s236_s11 = sshll.u32 %s1271_s10, 4  ;;  %p982_p9 = pneg %p1361_p8  ;;  %s237_s11 = int_to_ptr.vmem [resolvable:$true] %s236_s11 }
  0x17   : > { %s1272_s13 = smov [#allocation8]   ;;  %s1066_s15 = scalar_lea.vmem %s237_s11, 512 }
  0x18   : > { %p1370_p11 = pnand %p982_p9, %p1645_p1  ;;  %s252_s14 = sshll.u32 %s1272_s13, 4  ;;  %s253_s14 = int_to_ptr.vmem [resolvable:$true] %s252_s14 }
  0x19   : > { %p1067_p13 = scmp.ne.s32.totalorder %s237_s11, %s1066_s15  ;;  %p1074_p5 = scmp.lt.s32.totalorder %s237_s11, %s237_s11 }
  0x1a   : > { %p1057_p12 = pneg %p1370_p11  ;;  %p1075_p7 = scmp.lt.s32.totalorder %s1066_s15, %s1066_s15 }
  0x1c   : > { %p1069_p0 = pnand %p1067_p13, %p1057_p12  ;;  %p1076_p10 = por %p1075_p7, %p1074_p5 }
  0x1e   : > { %p1070_p3 = pneg %p1069_p0 }
  0x20   : > { %p1077_p9 = pnand %p1076_p10, %p1070_p3 }
  0x22   : > { %1080 = shalt.err (!%p1077_p9)
}
  0x23   : > { %s1273_s16 = smov 128   ;;  %s1274_s17 = smov 8  }
  0x24   : > { %s1657_s2 = sld [smem:[#allocation21_spill]]  ;;  %s1092_s20 = scalar_lea.vmem %s253_s14, 512 }
  0x25   : > { %p1093_p1 = scmp.ne.s32.totalorder %s253_s14, %s1092_s20  ;;  %p1100_p2 = scmp.lt.s32.totalorder %s253_s14, %s253_s14 }
  0x26   : > { %p1101_p6 = scmp.lt.s32.totalorder %s1092_s20, %s1092_s20 }
  0x27   : > { %p1095_p13 = pnand %p1093_p1, %p1057_p12 }
  0x28   : > { %p1102_p5 = por %p1101_p6, %p1100_p2 }
  0x29   : > { %p1096_p0 = pneg %p1095_p13 }
  0x2a   : > { %985 = dma.hbm_to_vmem [thread:$0]  (!%p1370_p11), %s1657_s2, 512, %s237_s11, [#allocation6], %s1273_s16, %s1273_s16, %s1274_s17  }
  0x2b   : > { %p1103_p10 = pnand %p1102_p5, %p1096_p0 }
  0x2d   : > { %1106 = shalt.err (!%p1103_p10)
}
  0x2e   : > { %s1658_s4 = sld [smem:[#allocation22_spill]]  ;;  %s1393_s23 = sadd.s32 1, %s1269_s27  }
  0x2f   : > { %s38_s29 = sadd.s32 1, %s1265_s26  ;;  %s35_s10 = ssub.s32 %s1269_s27, %s1393_s23 }
  0x30   : > { %p45_p1 = scmp.ne.s32.totalorder %s1265_s26, %s1261_s25  ;;  %p36_p2 = scmp.eq.s32.totalorder %s35_s10, 0 }
  0x31   : > { %p46_p6 = scmp.eq.s32.totalorder %s1269_s27, 0  ;;  %p1659_p12 = scmp.eq.s32.totalorder %s1342_s28, 1 }
  0x32   : > { %p1005_p7 = scmp.lt.s32.totalorder %s1269_s27, 2  ;;  %s269_s13 = sand.u32 1, %s1265_s26  }
  0x33   : > { %p1403_p3 = por %p1659_p12, %p45_p1  ;;  %p47_p9 = por %p46_p6, %p45_p1 }
  0x34   : > { %988 = dma.hbm_to_vmem [thread:$0]  (!%p1370_p11), %s1658_s4, 512, %s253_s14, [#allocation9], %s1273_s16, %s1273_s16, %s1274_s17  }
  0x35   : > { %s1660_s11 = scalar_select %p1403_p3, 1, 0 }
  0x36   : > { %s1409_s12 = scalar_select %p36_p2, %s1265_s26, %s38_s29  }
  0x37   : > { %s1412_s14 = sshll.u32 %s269_s13, 3  ;;  %s888_s15 = sshll.u32 %s1269_s27, 7 }
  0x38   : > { %1661 = sst [smem:[#allocation20_spill]] %s1409_s12  ;;  %s1418_s18 = scalar_lea.hbm %s1637_s0, %s888_s15 }
  0x39   : > { %s273_s19 = scalar_lea.vmem [#allocation2], %s1412_s14  ;;  %p1423_p11 = pnand %p1005_p7, %p47_p9 }
  0x3a   : > { %s280_s20 = sshll.u32 %s273_s19, 4  ;;  %s1430_s10 = scalar_lea.hbm %s1638_s1, %s888_s15  ;;  %s1421_s20 = int_to_ptr.vmem [resolvable:$true] %s280_s20 }
  0x3b   : > { %s287_s16 = sand.u32 1, %s1269_s27   ;;  %s270_s17 = scalar_lea.sflag [#allocation3], %s269_s13 }
  0x3c   : > { %s1107_s2 = scalar_lea.hbm %s1418_s18, 128  ;;  %p1109_p0 = pneg %p1423_p11 }
  0x3d   : > { %p1108_p13 = scmp.ne.s32.totalorder %s1418_s18, %s1107_s2  ;;  %s1112_s12 = scalar_lea.hbm %s1637_s0, 256 }
  0x3e   : > { %p1113_p1 = scmp.lt.s32.totalorder %s1418_s18, %s1637_s0  ;;  %p1114_p2 = scmp.lt.s32.totalorder %s1112_s12, %s1107_s2 }
  0x3f   : > { %p1110_p5 = pnand %p1109_p0, %p1108_p13 }
  0x40   : > { %p1115_p6 = por %p1114_p2, %p1113_p1 }
  0x41   : > { %p1111_p10 = pneg %p1110_p5 }
  0x43   : > { %p1116_p12 = pnand %p1115_p6, %p1111_p10 }
  0x45   : > { %1119 = shalt.err (!%p1116_p12)
}
  0x46   : > { %s1120_s13 = scalar_lea.vmem %s1421_s20, 128  ;;  %s1275_s4 = smov [#allocation2]  }
  0x47   : > { %p1121_p7 = scmp.ne.s32.totalorder %s1421_s20, %s1120_s13  ;;  %s1125_s15 = sshll.u32 %s1275_s4, 4  ;;  %s1126_s15 = int_to_ptr.vmem [resolvable:$false] %s1125_s15 }
  0x48   : > { %s1127_s29 = scalar_lea.vmem %s1126_s15, 256  ;;  %p1128_p5 = scmp.lt.s32.totalorder %s1421_s20, %s1126_s15 }
  0x49   : > { %p1123_p9 = pnand %p1121_p7, %p1109_p0  ;;  %p1129_p3 = scmp.lt.s32.totalorder %s1127_s29, %s1120_s13 }
  0x4b   : > { %p1124_p13 = pneg %p1123_p9  ;;  %p1130_p4 = por %p1129_p3, %p1128_p5 }
  0x4d   : > { %p1131_p1 = pnand %p1130_p4, %p1124_p13 }
  0x4f   : > { %1134 = shalt.err (!%p1131_p1)
}
  0x50   : > { %992 = dma.hbm_to_vmem [thread:$0]  (!%p1423_p11), %s1418_s18, 128, %s1421_s20, %s270_s17  }
  0x51   : > { %s291_s2 = scalar_lea.vmem [#allocation5], %s1412_s14  ;;  %s288_s12 = scalar_lea.sflag [#allocation6], %s287_s16 }
  0x52   : > { %s298_s26 = sshll.u32 %s291_s2, 4  ;;  %s1135_s19 = scalar_lea.hbm %s1430_s10, 128  ;;  %s299_s26 = int_to_ptr.vmem [resolvable:$true] %s298_s26 }
  0x53   : > { %p1136_p3 = scmp.ne.s32.totalorder %s1430_s10, %s1135_s19  ;;  %s1140_s4 = scalar_lea.hbm %s1638_s1, 256 }
  0x54   : > { %p1141_p2 = scmp.lt.s32.totalorder %s1430_s10, %s1638_s1  ;;  %p1142_p6 = scmp.lt.s32.totalorder %s1140_s4, %s1135_s19 }
  0x55   : > { %p1138_p4 = pnand %p1136_p3, %p1109_p0 }
  0x56   : > { %p1143_p12 = por %p1142_p6, %p1141_p2 }
  0x57   : > { %p1139_p10 = pneg %p1138_p4 }
  0x59   : > { %p1144_p7 = pnand %p1143_p12, %p1139_p10 }
  0x5b   : > { %1147 = shalt.err (!%p1144_p7)
}
  0x5c   : > { %s1148_s14 = scalar_lea.vmem %s299_s26, 128  ;;  %s1276_s18 = smov [#allocation5]  }
  0x5d   : > { %p1149_p9 = scmp.ne.s32.totalorder %s299_s26, %s1148_s14  ;;  %s1153_s20 = sshll.u32 %s1276_s18, 4  ;;  %s1154_s20 = int_to_ptr.vmem [resolvable:$false] %s1153_s20 }
  0x5e   : > { %s1155_s16 = scalar_lea.vmem %s1154_s20, 256  ;;  %p1156_p1 = scmp.lt.s32.totalorder %s299_s26, %s1154_s20 }
  0x5f   : > { %p1151_p13 = pnand %p1149_p9, %p1109_p0  ;;  %p1157_p3 = scmp.lt.s32.totalorder %s1155_s16, %s1148_s14 }
  0x61   : > { %p1152_p5 = pneg %p1151_p13  ;;  %p1158_p4 = por %p1157_p3, %p1156_p1 }
  0x63   : > { %p1159_p8 = pnand %p1158_p4, %p1152_p5 }
  0x65   : > { %1162 = shalt.err (!%p1159_p8)
}
  0x66   : > { %995 = dma.hbm_to_vmem [thread:$0]  (!%p1423_p11), %s1430_s10, 128, %s299_s26, %s288_s12  }
  0x67   : > { %p1663_p10 = scmp.ne.s32.totalorder %s1655_s9, 0 }
  0x68   : > { %s1481_s17 = sand.u32 (!%p1663_p10), 1, %s1261_s25   ;;  %p1664_p0 = scmp.ne.s32.totalorder (!%p1663_p10), %s1653_s30, 0 }
  0x69   : > { %307 = sbr.rel (%p1663_p10) target bundleno = 1285 (0x505), region = 44  ;;  %s1484_s2 = sshll.u32 (!%p1663_p10), %s1481_s17, 3 }
  0x6a   : > { %s310_s19 = scalar_lea.sflag (!%p1663_p10), [#allocation3], %s1481_s17  ;;  %s313_s22 = scalar_lea.vmem (!%p1663_p10), [#allocation2], %s1484_s2 }
  0x6e   : > { %1232 = dma.done.wait (%p1664_p0), %s310_s19, 128  }
  0x6f   : > { %1234 = vsyncadd (%p1664_p0), %s310_s19, 4294967168  ;;  %s318_s9 = sand.u32 1, %s1342_s28   ;;  %s322_s10 = scalar_lea.vmem [#allocation5], %s1484_s2 }
  0x70   : > { %s319_s21 = scalar_lea.sflag [#allocation6], %s318_s9 }
  0x71   : > { %1236 = dma.done.wait (%p1664_p0), %s319_s21, 128  }
  0x72   : > { %1238 = vsyncadd (%p1664_p0), %s319_s21, 4294967168  ;;  %p1665_p8 = scmp.eq.s32.totalorder %s1342_s28, 0 }
  0x74   : > { %1240 = dma.done.wait (%p1665_p8), [#allocation6], 512   ;;  %p1666_p11 = pmov %p1665_p8 }
  0x75   : > { %p1667_p2 = pmov %p1665_p8 }
  0x76   : > { %1242 = vsyncadd (%p1666_p11), [#allocation6], 4294966784 }
  0x77   : > { %1244 = dma.done.wait (%p1667_p2), [#allocation9], 512   ;;  %p1668_p6 = pmov %p1667_p2 }
  0x78   : > { %v1277_v0 = vmov 0.0   ;;  %vm1278_vm0 = vmmov 0   ;;  %v374_v1 = vld [vmem:[#allocation7 + $0x10] sm:$0xff]  ;;  %v375_v2 = vld [vmem:[#allocation7 + $0x18] sm:$0xff]  ;;  %v372_v3 = vld [vmem:[#allocation7] sm:$0xff]  ;;  %vm395_vm1 = vcmask 261120  }
  0x79   : > { %1246 = vsyncadd (%p1668_p6), [#allocation9], 4294966784  ;;  %926 = vmatprep.subr.bf16.mxu0 %v1277_v0  ;;  %930 = vmatprep.mubr.msk.bf16.mxu0 %vm1278_vm0, %v1277_v0  ;;  %v377_v4 = vpack.c.bf16 %v375_v2, %v374_v1  ;;  %v373_v5 = vld [vmem:[#allocation7 + $0x8] sm:$0xff]  ;;  %v1514_v8 = vld [vmem:[%s322_s10] sm:$0xff]  ;;  %vm544_vm2 = vcmask 64512   ;;  %vm561_vm3 = vcmask 1043456  }
  0x7a   : > { %934 = vmatprep.subr.bf16.mxu1 %v1277_v0  ;;  %938 = vmatprep.mubr.msk.bf16.mxu1 %vm1278_vm0, %v1277_v0  ;;  %v376_v6 = vpack.c.bf16 %v373_v5, %v372_v3  ;;  %v1512_v7 = vld [vmem:[%s313_s22] sm:$0xff]  ;;  %v380_v10 = vld [vmem:[#allocation8 + $0x10] sm:$0xff]  ;;  %v381_v11 = vld [vmem:[#allocation8 + $0x18] sm:$0xff]  ;;  %v557_v59 = vpack.c.bf16 %v1514_v8, %v1514_v8  ;;  %s908_s4 = sshll.u32 %s1342_s28, 7  ;;  %s363_s15 = scalar_lea.vmem [#allocation10], %s1484_s2 }
  0x7b   : > { %927 = vmatpush3.bf16.msra.mxu0 %v377_v4  ;;  %v388_v9 = vpack.c.bf16 %v1514_v8, %v1512_v7  ;;  %v383_v12 = vpack.c.bf16 %v381_v11, %v380_v10  ;;  %v378_v13 = vld [vmem:[#allocation8] sm:$0xff]  ;;  %v379_v14 = vld [vmem:[#allocation8 + $0x8] sm:$0xff]  ;;  %v658_v63 = vpack.c.bf16 %v1512_v7, %v1512_v7  ;;  %s725_s29 = sshll.u32 %s363_s15, 4  ;;  %s1561_s20 = scalar_lea.hbm %s1643_s6, %s908_s4  ;;  %s1563_s29 = int_to_ptr.vmem [resolvable:$true] %s725_s29 }
  0x7c   : > { %928 = vmatprep.subr.bf16.mxu0 %v1277_v0  ;;  %v382_v15 = vpack.c.bf16 %v379_v14, %v378_v13  ;;  %v898_v16 = vld [vmem:[%s1640_s3] ss:$0 sm:$0xff]  ;;  %v563_v60 = vsel %vm561_vm3, %v557_v59, 0  ;;  %s707_s16 = scalar_lea.sflag [#allocation4], %s1481_s17  ;;  %s1163_s19 = scalar_lea.vmem %s1563_s29, 128 }
  0x7d   : > { %935 = vmatpush3.bf16.msra.mxu1 %v383_v12  ;;  %v900_v26 = vld [vmem:[%s1642_s5] ss:$0 sm:$0xff]  ;;  %v663_v4 = vsel %vm561_vm3, %v658_v63, 0  ;;  %p1164_p12 = scmp.ne.s32.totalorder %s1563_s29, %s1163_s19  ;;  %p1669_p7 = scmp.ne.s32.totalorder %s1660_s11, 0 }
  0x7e   : > { %936 = vmatprep.subr.bf16.mxu1 %v1277_v0  ;;  %s1279_s22 = smov [#allocation10]  }
  0x7f   : > { %929 = vmatpush3.bf16.msra.mxu0 %v376_v6  ;;  %p1165_p9 = pnand %p1164_p12, %p1669_p7  ;;  %s1167_s9 = sshll.u32 %s1279_s22, 4  ;;  %s1168_s9 = int_to_ptr.vmem [resolvable:$false] %s1167_s9 }
  0x80   : > { %942 = vmatprep.subr.bf16.mxu0 %v1277_v0  ;;  %s1169_s21 = scalar_lea.vmem %s1168_s9, 256  ;;  %p1170_p5 = scmp.lt.s32.totalorder %s1563_s29, %s1168_s9 }
  0x81   : > { %937 = vmatpush3.bf16.msra.mxu1 %v382_v15  ;;  %p1166_p13 = pneg %p1165_p9  ;;  %p1171_p1 = scmp.lt.s32.totalorder %s1169_s21, %s1163_s19 }
  0x82   : > { %931 = vmatmul.mubr.msk.bf16.vlgmr.msra.gmra.mxu0 %vm395_vm1, %v388_v9  ;;  %948 = vmatprep.subr.bf16.mxu1 %v1277_v0 }
  0x83   : > { %944 = vmatprep.mubr.msk.bf16.mxu0 %vm1278_vm0, %v1277_v0  ;;  %p1172_p3 = por %p1171_p1, %p1170_p5 }
  0x85   : > { %p1173_p4 = pnand %p1172_p3, %p1166_p13 }
 0x142   : > { %v433_v17 = vpop.f32.mrf.mxu0 }
 0x143   : > { %v434_v19 = vadd.f32 %v898_v16, %v433_v17 }
 0x144   : > { %v932_v18 = vpop.f32.mrf.mxu0 }
 0x145   : > { %v440_v23 = vmax.f32 %v434_v19, 0.0 }
 0x146   : > { %v436_v20 = vpop.f32.mrf.mxu0 }
 0x147   : > { %v437_v21 = vadd.f32 %v898_v16, %v436_v20 }
 0x148   : > { %v933_v22 = vpop.f32.mrf.mxu0 }
 0x149   : > { %v441_v24 = vmax.f32 %v437_v21, 0.0 }
 0x14b   : > { %v442_v25 = vpack.c.bf16 %v441_v24, %v440_v23 }
 0x14d   : > { %939 = vmatmul.mubr.msk.bf16.vlgmr.msra.gmra.mxu1 %vm395_vm1, %v442_v25 }
 0x14e   : > { %950 = vmatprep.mubr.msk.bf16.mxu1 %vm1278_vm0, %v1277_v0  ;;  %949 = vmatpush3.bf16.msra.mxu1 %v563_v60 }
 0x14f   : > { %960 = vmatprep.subr.bf16.mxu1 %v1277_v0 }
 0x20d   : > { %v486_v27 = vpop.f32.mrf.mxu1 }
 0x20e   : > { %v487_v29 = vadd.f32 %v900_v26, %v486_v27 }
 0x20f   : > { %v940_v28 = vpop.f32.mrf.mxu1 }
 0x210   : > { %v493_v33 = vmax.f32 %v487_v29, 0.0 }
 0x211   : > { %v489_v30 = vpop.f32.mrf.mxu1 }
 0x212   : > { %v490_v31 = vadd.f32 %v900_v26, %v489_v30 }
 0x213   : > { %v941_v32 = vpop.f32.mrf.mxu1 }
 0x214   : > { %v494_v34 = vmax.f32 %v490_v31, 0.0 }
 0x216   : > { %v495_v35 = vpack.c.bf16 %v494_v34, %v493_v33 }
 0x218   : > { %v497_v36 = vrot.slane %v495_v35, 4  ;;  %v499_v38 = vsel %vm395_vm1, %v495_v35, 0 }
 0x21a   : > { %v502_v37 = vsel %vm395_vm1, %v497_v36, 0 }
 0x21b   : > { %943 = vmatpush3.bf16.xpose.msra.mxu0 %v502_v37 }
 0x21c   : > { %954 = vmatprep.subr.bf16.mxu0 %v1277_v0 }
 0x222   : > { %945 = vmatmul.mubr.msk.bf16.vlgmr.msra.gmra.mxu0 %vm395_vm1, %v495_v35 }
 0x223   : > { %955 = vmatpush3.bf16.xpose.msra.mxu0 %v499_v38  ;;  %956 = vmatprep.mubr.msk.bf16.mxu0 %vm1278_vm0, %v1277_v0 }
 0x22a   : > { %957 = vmatmul.mubr.msk.bf16.vlgmr.msra.gmra.mxu0 %vm395_vm1, %v497_v36 }
 0x2e2   : > { %v538_v39 = vpop.f32.mrf.mxu0 }
 0x2e3   : > { %v545_v40 = vsel %vm544_vm2, %v538_v39, -inf }
 0x2e4   : > { %546 = vmax.xlane.f32.xlu0 %v545_v40  ;;  %v946_v41 = vpop.f32.mrf.mxu0 }
 0x2e6   : > { %v541_v42 = vpop.f32.mrf.mxu0 }
 0x2e8   : > { %v947_v43 = vpop.f32.mrf.mxu0 }
 0x2ea   : > { %v640_v44 = vpop.f32.mrf.mxu0 }
 0x2eb   : > { %v646_v45 = vsel %vm544_vm2, %v640_v44, -inf }
 0x2ec   : > { %647 = vmax.xlane.f32.xlu0 %v646_v45  ;;  %v958_v46 = vpop.f32.mrf.mxu0 }
 0x2ee   : > { %v643_v47 = vpop.f32.mrf.mxu0 }
 0x2f0   : > { %v959_v48 = vpop.f32.mrf.mxu0 }
 0x36d   : > { %v547_v49 = vpop.xlane.xlu0 %546 }
 0x36e   : > { %v548_v50 = vsub.f32 %v538_v39, %v547_v49 }
 0x370   : > { %v549_v51 = vmul.f32 1.442695, %v548_v50 }
 0x372   : > { %1047 = vpow2.f32 %v549_v51 }
 0x375   : > { %v648_v52 = vpop.xlane.xlu0 %647 }
 0x376   : > { %v649_v53 = vsub.f32 %v640_v44, %v648_v52 }
 0x378   : > { %v650_v54 = vmul.f32 1.442695, %v649_v53 }
 0x37a   : > { %1049 = vpow2.f32 %v650_v54 }
 0x37f   : > { %v1048_v55 = vpop.eup %1047 }
 0x380   : > { %v551_v56 = vsel %vm544_vm2, %v1048_v55, 0.0 }
 0x381   : > { %552 = vadd.xlane.f32.xlu1 %v551_v56 }
 0x387   : > { %v1050_v57 = vpop.eup %1049 }
 0x388   : > { %v652_v58 = vsel %vm544_vm2, %v1050_v57, 0.0 }
 0x389   : > { %653 = vadd.xlane.f32.xlu1 %v652_v58 }
 0x40a   : > { %v553_v61 = vpop.xlane.xlu1 %552 }
 0x40b   : > { %1051 = vrcp.f32 %v553_v61 }
 0x412   : > { %v654_v62 = vpop.xlane.xlu1 %653 }
 0x413   : > { %1053 = vrcp.f32 %v654_v62 }
 0x418   : > { %v1052_v1 = vpop.eup %1051 }
 0x419   : > { %v555_v2 = vmul.f32 %v1052_v1, %v1048_v55 }
 0x41b   : > { %v556_v3 = vpack.c.bf16 %v555_v2, %v555_v2 }
 0x41d   : > { %951 = vmatmul.mubr.msk.bf16.vlgmr.msra.gmra.mxu1 %vm544_vm2, %v556_v3 }
 0x41e   : > { %961 = vmatpush3.bf16.msra.mxu1 %v663_v4  ;;  %962 = vmatprep.mubr.msk.bf16.mxu1 %vm1278_vm0, %v1277_v0 }
 0x420   : > { %v1054_v5 = vpop.eup %1053 }
 0x421   : > { %v656_v6 = vmul.f32 %v1054_v5, %v1050_v57 }
 0x423   : > { %v657_v8 = vpack.c.bf16 %v656_v6, %v656_v6 }
 0x425   : > { %963 = vmatmul.mubr.msk.bf16.vlgmr.msra.gmra.mxu1 %vm544_vm2, %v657_v8 }
 0x4dd   : > { %v599_v0 = vpop.f32.mrf.mxu1 }
 0x4de   : > { %605 = vst.msk [vmem:[%s363_s15] sm:$0xff] %vm395_vm1, %v599_v0 }
 0x4df   : > { %v952_v7 = vpop.f32.mrf.mxu1 }
 0x4e0   : > { %1176 = shalt.err (!%p1173_p4)
}
 0x4e1   : > { %s1177_s10 = scalar_lea.hbm %s1561_s20, 128  ;;  %s1181_s12 = scalar_lea.hbm %s1643_s6, 256 }
 0x4e2   : > { %p1178_p10 = scmp.ne.s32.totalorder %s1561_s20, %s1177_s10  ;;  %p1182_p11 = scmp.lt.s32.totalorder %s1561_s20, %s1643_s6 }
 0x4e3   : > { %p1183_p2 = scmp.lt.s32.totalorder %s1181_s12, %s1177_s10 }
 0x4e4   : > { %p1179_p0 = pnand %p1178_p10, %p1669_p7 }
 0x4e5   : > { %p1184_p6 = por %p1183_p2, %p1182_p11 }
 0x4e6   : > { %p1180_p8 = pneg %p1179_p0 }
 0x4e8   : > { %p1185_p12 = pnand %p1184_p6, %p1180_p8 }
 0x4ea   : > { %1188 = shalt.err (!%p1185_p12)
}
 0x4eb   : > { %978 = dma.vmem_to_hbm [thread:$0]  (%p1669_p7), %s1563_s29, 128, %s1561_s20, %s707_s16   ;;  %v602_v9 = vpop.f32.mrf.mxu1 }
 0x4ec   : > { %s370_s14 = scalar_lea.vmem [#allocation11], %s1484_s2  ;;  %s1593_s9 = scalar_lea.hbm %s1644_s7, %s908_s4 }
 0x4ed   : > { %s738_s18 = sshll.u32 %s370_s14, 4  ;;  %v953_v10 = vpop.f32.mrf.mxu1  ;;  %s712_s29 = scalar_lea.sflag [#allocation12], %s1481_s17  ;;  %s1595_s18 = int_to_ptr.vmem [resolvable:$true] %s738_s18 }
 0x4ee   : > { %s1189_s20 = scalar_lea.vmem %s1595_s18, 128  ;;  %s1280_s28 = smov [#allocation11]  }
 0x4ef   : > { %v699_v11 = vpop.f32.mrf.mxu1  ;;  %p1190_p9 = scmp.ne.s32.totalorder %s1595_s18, %s1189_s20  ;;  %s1193_s2 = sshll.u32 %s1280_s28, 4  ;;  %s1194_s2 = int_to_ptr.vmem [resolvable:$false] %s1193_s2 }
 0x4f0   : > { %705 = vst.msk [vmem:[%s370_s14] sm:$0xff] %vm395_vm1, %v699_v11  ;;  %s1195_s4 = scalar_lea.vmem %s1194_s2, 256  ;;  %p1196_p1 = scmp.lt.s32.totalorder %s1595_s18, %s1194_s2 }
 0x4f1   : > { %v964_v12 = vpop.f32.mrf.mxu1  ;;  %p1191_p13 = pnand %p1190_p9, %p1669_p7  ;;  %p1197_p3 = scmp.lt.s32.totalorder %s1195_s4, %s1189_s20 }
 0x4f3   : > { %p1192_p5 = pneg %p1191_p13  ;;  %p1198_p4 = por %p1197_p3, %p1196_p1 }
 0x4f5   : > { %p1199_p10 = pnand %p1198_p4, %p1192_p5 }
 0x4f7   : > { %1202 = shalt.err (!%p1199_p10)
}
 0x4f8   : > { %s1203_s16 = scalar_lea.hbm %s1593_s9, 128  ;;  %s1207_s10 = scalar_lea.hbm %s1644_s7, 256 }
 0x4f9   : > { %p1204_p0 = scmp.ne.s32.totalorder %s1593_s9, %s1203_s16  ;;  %p1208_p2 = scmp.lt.s32.totalorder %s1593_s9, %s1644_s7 }
 0x4fa   : > { %p1209_p6 = scmp.lt.s32.totalorder %s1207_s10, %s1203_s16 }
 0x4fb   : > { %p1205_p8 = pnand %p1204_p0, %p1669_p7 }
 0x4fc   : > { %p1210_p12 = por %p1209_p6, %p1208_p2 }
 0x4fd   : > { %p1206_p11 = pneg %p1205_p8 }
 0x4ff   : > { %p1211_p9 = pnand %p1210_p12, %p1206_p11 }
 0x501   : > { %1214 = shalt.err (!%p1211_p9)
}
 0x502   : > { %979 = dma.vmem_to_hbm [thread:$0]  (%p1669_p7), %s1595_s18, 128, %s1593_s9, %s712_s29   ;;  %v702_v13 = vpop.f32.mrf.mxu1 }
 0x504   : > { %v965_v14 = vpop.f32.mrf.mxu1 }
 0x505 PF: > { %s750_s12 = sand.u32 1, %s1257_s24   ;;  %p1670_p13 = scmp.ne.s32.totalorder %s1654_s8, 0 }
 0x506   : > { %p1671_p5 = scmp.ge.s32.totalorder %s1269_s27, 2  ;;  %s751_s13 = scalar_lea.sflag [#allocation4], %s750_s12 }
 0x508   : > { %p997_p1 = pnand %p1671_p5, %p1670_p13 }
 0x50a   : > { %p998_p3 = pneg %p997_p1 }
 0x50c   : > { %1248 = dma.done.wait (%p998_p3), %s751_s13, 128  }
 0x50d   : > { %1250 = vsyncadd (%p998_p3), %s751_s13, 4294967168  ;;  %s760_s15 = scalar_lea.sflag [#allocation12], %s750_s12 }
 0x50e   : > { %1252 = dma.done.wait (%p998_p3), %s760_s15, 128  }
 0x50f   : > { %1254 = vsyncadd (%p998_p3), %s760_s15, 4294967168  ;;  %s1672_s11 = sld [smem:[#allocation19_spill]]  ;;  %p28_p7 = scmp.ge.s32.totalorder %s1393_s23, 4  }
 0x510   : > { %s1673_s26 = sld [smem:[#allocation20_spill]]  ;;  %s1674_s24 = smov %s1261_s25 }
 0x511   : > { %s1676_s27 = smov %s1393_s23  ;;  %30 = sbr.rel (!%p28_p7) target bundleno = 13 (0xd), region = 127 }
 0x515   : > { %s1675_s25 = smov %s1672_s11 }
 0x516   :  { %765 = vsyncpa [#allocation3], 1 }
 0x517   :  { %767 = vsyncpa [#allocation3 + $0x1], 1 }
 0x518   :  { %768 = vsyncpa [#allocation6], 1 }
 0x519   :  { %770 = vsyncpa [#allocation6 + $0x1], 1 }
 0x51a   :  { %771 = vsyncpa [#allocation9], 1 }
 0x51b   :  { %772 = vsyncpa [#allocation4], 1 }
 0x51c   :  { %774 = vsyncpa [#allocation4 + $0x1], 1 }
 0x51d   :  { %775 = vsyncpa [#allocation12], 1 }
 0x51e   :  { %777 = vsyncpa [#allocation12 + $0x1], 1 }

</bundles_post_ra>
